<compile_context>
chip_gen: v7x
topology: tpu7x:2x2x1
jax: 0.10.0
libtpu: 0.0.40
codegen_flags: <defaults>
</compile_context>

<pallas_src>
import jax
import jax.numpy as jnp
from jax.experimental import pallas as pl
from jax.experimental.pallas import tpu as pltpu


def _fused_kernel(gh_ref, lh_ref, pb_ref, wsq_ref, watt_ref, ball_ref,
                  lang_out_ref, graph_out_ref):
    BB, NV, D = gh_ref.shape
    _, NL, _ = lh_ref.shape
    bf16, f32 = jnp.bfloat16, jnp.float32

    wsq = wsq_ref[...]                       # [D, 6D] bf16: [lang | q | graph | k | v | prob]
    b_lang = ball_ref[0:1, :]                # [1, D] f32
    b_prob = ball_ref[1:2, :]
    b_graph = ball_ref[2:3, :]

    gh = gh_ref[...].reshape(BB * NV, D)     # graph node feats, flattened for MXU M
    lh = lh_ref[...].reshape(BB * NL, D)     # lang node feats, flattened

    # ---- lang_layer: node-wise Linear + ReLU ------------------------------------
    lang2 = jnp.maximum(
        jnp.dot(lh.astype(bf16), wsq[:, 0:D], preferred_element_type=f32) + b_lang,
        0.0)                                                          # [BB*NL, D] f32
    lang_out_ref[...] = lang2.reshape(BB, NL, D).astype(lang_out_ref.dtype)

    # ---- projections from graph node feats: q (cross) and hw (graph_layer) ------
    qg = jnp.dot(gh.astype(bf16), wsq[:, D:3 * D], preferred_element_type=f32)
    q = qg[:, 0:D].reshape(BB, NV, D)
    hw = qg[:, D:2 * D].reshape(BB, NV, D)

    # ---- projections from lang2: k, v --------------------------------------------
    kv = jnp.dot(lang2.astype(bf16), wsq[:, 3 * D:5 * D], preferred_element_type=f32)
    k = kv[:, 0:D].reshape(BB, NL, D)
    v = kv[:, D:2 * D].reshape(BB, NL, D)

    # ---- cross_layer: cross attention graph nodes -> lang nodes (+ residual) ----
    s = jnp.einsum('bqd,bkd->bqk', q.astype(bf16), k.astype(bf16),
                   preferred_element_type=f32) * (D ** -0.5)          # [BB, NV, NL]
    s = s - jnp.max(s, axis=-1, keepdims=True)
    p = jnp.exp(s)
    p = p * pl.reciprocal(jnp.sum(p, axis=-1, keepdims=True), approx=True)
    c = jnp.einsum('bqk,bkd->bqd', p.astype(bf16), v.astype(bf16),
                   preferred_element_type=f32) + pb_ref[...]          # [BB, NV, D]

    # ---- prob_layer: Linear + ReLU, then node / edge att logits (one [D,3] dot) --
    c2 = jnp.maximum(
        jnp.dot(c.reshape(BB * NV, D).astype(bf16), wsq[:, 5 * D:6 * D],
                preferred_element_type=f32) + b_prob, 0.0)            # [BB*NV, D]
    logits = jnp.dot(c2.astype(bf16), watt_ref[...],
                     preferred_element_type=f32).reshape(BB, NV, 3)   # [node, esrc, edst]

    # node attention: per-graph softmax over the NV nodes (matches per-graph loop
    # in the reference forward).
    nl = logits[:, :, 0:1]                                            # [BB, NV, 1]
    nl = nl - jnp.max(nl, axis=1, keepdims=True)
    ne = jnp.exp(nl)
    natt = ne * pl.reciprocal(jnp.sum(ne, axis=1, keepdims=True), approx=True)

    # edge attention: per-graph softmax over all NV*NV forward edges (first half of
    # the 2*NV*NV conceptual edge set). Edge i->j logit is s1[i] + s2[j], so the
    # NV*NV softmax factorizes exactly:
    #   softmax_{i,j}(s1[i]+s2[j]) = softmax_i(s1)[i] * softmax_j(s2)[j]
    # which removes the NV x NV matrix, its transpose, and the bji,bid matmul.
    s1 = logits[:, :, 1:2]                                            # src term [BB, NV, 1]
    s2 = logits[:, :, 2:3]                                            # dst term [BB, NV, 1]
    e1 = jnp.exp(s1 - jnp.max(s1, axis=1, keepdims=True))
    a1 = e1 * pl.reciprocal(jnp.sum(e1, axis=1, keepdims=True), approx=True)
    e2 = jnp.exp(s2 - jnp.max(s2, axis=1, keepdims=True))
    a2 = e2 * pl.reciprocal(jnp.sum(e2, axis=1, keepdims=True), approx=True)

    # ---- graph_layer: att-weighted dense GAT aggregation + ReLU -------------------
    # agg[b, j, :] = sum_i eatt[b, i->j] * hw[b, i, :] = a2[b, j] * sum_i a1[b, i] hw[b, i, :]
    msg = jnp.sum(a1 * hw, axis=1, keepdims=True)                     # [BB, 1, D]
    agg = a2 * msg                                                    # [BB, NV, D]
    graph_out_ref[...] = jnp.maximum(natt * agg + b_graph, 0.0).astype(graph_out_ref.dtype)


def graph_propagate_forward(lang_h, prob_h, graph_h, params, *, block_batch=None):
    B, NL, D = lang_h.shape
    _, NV, _ = graph_h.shape
    f32 = jnp.float32

    if block_batch is None:
        # Batch enough graphs per grid step so the flattened MXU M-dim approaches 128,
        # constrained to a divisor of B. (On v7x with larger B, block_batch = B // 2
        # keeps both TensorCores busy via the 'parallel' grid axis.)
        target = max(1, -(-128 // max(NV, NL)))       # cdiv(128, N)
        block_batch = 1
        for cand in range(1, B + 1):
            if B % cand == 0 and cand <= target:
                block_batch = cand
    BB = block_batch
    assert B % BB == 0, "block_batch must divide B"

    # Pack the many small parameters into a few lane-dense slabs (fewer DMAs);
    # MXU operands in bf16, biases stay f32.
    w_sq = jnp.concatenate(
        [params["w_lang"], params["w_q"], params["w_graph"],
         params["w_k"], params["w_v"], params["w_prob"]], axis=1).astype(jnp.bfloat16)
    w_att3 = jnp.concatenate(
        [params["w_natt"].T, params["w_eatt_src"].T, params["w_eatt_dst"].T],
        axis=1).astype(jnp.bfloat16)                                  # [D, 3]
    b_all = jnp.concatenate(
        [params["b_lang"], params["b_prob"], params["b_graph"]], axis=0).astype(f32)

    full = lambda shape: pl.BlockSpec(shape, lambda b: (0, 0))

    lang2, graph_out = pl.pallas_call(
        _fused_kernel,
        out_shape=(jax.ShapeDtypeStruct((B, NL, D), f32),
                   jax.ShapeDtypeStruct((B, NV, D), f32)),
        grid=(B // BB,),
        in_specs=[pl.BlockSpec((BB, NV, D), lambda b: (b, 0, 0)),     # graph node feats
                  pl.BlockSpec((BB, NL, D), lambda b: (b, 0, 0)),     # lang node feats
                  pl.BlockSpec((BB, NV, D), lambda b: (b, 0, 0)),     # prob_graph feats
                  full((D, 6 * D)),                                   # packed square weights
                  full((D, 3)),                                       # packed att vectors
                  full((3, D))],                                      # packed biases
        out_specs=(pl.BlockSpec((BB, NL, D), lambda b: (b, 0, 0)),
                   pl.BlockSpec((BB, NV, D), lambda b: (b, 0, 0))),
        compiler_params=pltpu.CompilerParams(dimension_semantics=("parallel",)),
    )(graph_h, lang_h, prob_h, w_sq, w_att3, b_all)

    return lang2, graph_out


def init_params(D, key):
    ks = jax.random.split(key, 10)
    scale = 1.0 / (D ** 0.5)
    f32 = jnp.float32
    return {
        "w_lang":     jax.random.normal(ks[0], (D, D), f32) * scale,
        "b_lang":     jnp.zeros((1, D), f32),
        "w_q":        jax.random.normal(ks[1], (D, D), f32) * scale,
        "w_k":        jax.random.normal(ks[2], (D, D), f32) * scale,
        "w_v":        jax.random.normal(ks[3], (D, D), f32) * scale,
        "w_prob":     jax.random.normal(ks[4], (D, D), f32) * scale,
        "b_prob":     jnp.zeros((1, D), f32),
        "w_natt":     jax.random.normal(ks[5], (1, D), f32) * scale,
        "w_eatt_src": jax.random.normal(ks[6], (1, D), f32) * scale,
        "w_eatt_dst": jax.random.normal(ks[7], (1, D), f32) * scale,
        "w_graph":    jax.random.normal(ks[8], (D, D), f32) * scale,
        "b_graph":    jnp.zeros((1, D), f32),
    }


if __name__ == "__main__":
    B, NL, NV, D = 2, 8, 8, 128
    key = jax.random.PRNGKey(0)
    k1, k2, k3, k4 = jax.random.split(key, 4)

    lang_graph = jax.random.normal(k1, (B, NL, D), jnp.float32)   # language graph node feats
    prob_graph = jax.random.normal(k2, (B, NV, D), jnp.float32)   # probability graph node feats
    graph      = jax.random.normal(k3, (B, NV, D), jnp.float32)   # visual graph node feats
    params = init_params(D, k4)

    fwd = jax.jit(graph_propagate_forward)
    lang_out, graph_out = fwd(lang_graph, prob_graph, graph, params)
    jax.block_until_ready((lang_out, graph_out))

    assert lang_out.shape == (B, NL, D)
    assert graph_out.shape == (B, NV, D)
    assert bool(jnp.all(jnp.isfinite(lang_out))) and bool(jnp.all(jnp.isfinite(graph_out)))
    print("KERNEL_OK")
</pallas_src>

<mosaic_0001>
module attributes {stable_mosaic.version = 11 : i64} {
  func.func @_fused_kernel(%arg0: i32, %arg1: memref<2x8x128xf32, #tpu.memory_space<vmem>>, %arg2: memref<2x8x128xf32, #tpu.memory_space<vmem>>, %arg3: memref<2x8x128xf32, #tpu.memory_space<vmem>>, %arg4: memref<128x768xbf16, #tpu.memory_space<vmem>>, %arg5: memref<128x3xbf16, #tpu.memory_space<vmem>>, %arg6: memref<3x128xf32, #tpu.memory_space<vmem>>, %arg7: memref<2x8x128xf32, #tpu.memory_space<vmem>>, %arg8: memref<2x8x128xf32, #tpu.memory_space<vmem>>) attributes {dimension_semantics = [#tpu.dimension_semantics<parallel>], iteration_bounds = array<i64: 1>, scalar_prefetch = 0 : i64, scratch_operands = 0 : i64, tpu.core_type = #tpu.core_type<tc>, window_params = [{transform_indices = @transform_0, window_bounds = array<i64: 2, 8, 128>}, {transform_indices = @transform_1, window_bounds = array<i64: 2, 8, 128>}, {transform_indices = @transform_2, window_bounds = array<i64: 2, 8, 128>}, {pipeline_mode = #tpu.pipeline_mode<synchronous>, transform_indices = @transform_3, window_bounds = array<i64: 128, 768>}, {pipeline_mode = #tpu.pipeline_mode<synchronous>, transform_indices = @transform_4, window_bounds = array<i64: 128, 3>}, {pipeline_mode = #tpu.pipeline_mode<synchronous>, transform_indices = @transform_5, window_bounds = array<i64: 3, 128>}, {transform_indices = @transform_6, window_bounds = array<i64: 2, 8, 128>}, {transform_indices = @transform_7, window_bounds = array<i64: 2, 8, 128>}]} {
    %c0 = arith.constant 0 : index
    %c0_0 = arith.constant 0 : index
    %0 = vector.load %arg4[%c0, %c0_0] : memref<128x768xbf16, #tpu.memory_space<vmem>>, vector<128x768xbf16>
    %c0_1 = arith.constant 0 : index
    %c0_2 = arith.constant 0 : index
    %1 = vector.load %arg6[%c0_1, %c0_2] : memref<3x128xf32, #tpu.memory_space<vmem>>, vector<1x128xf32>
    %c1 = arith.constant 1 : index
    %c0_3 = arith.constant 0 : index
    %2 = vector.load %arg6[%c1, %c0_3] : memref<3x128xf32, #tpu.memory_space<vmem>>, vector<1x128xf32>
    %c2 = arith.constant 2 : index
    %c0_4 = arith.constant 0 : index
    %3 = vector.load %arg6[%c2, %c0_4] : memref<3x128xf32, #tpu.memory_space<vmem>>, vector<1x128xf32>
    %c0_5 = arith.constant 0 : index
    %c0_6 = arith.constant 0 : index
    %c0_7 = arith.constant 0 : index
    %4 = vector.load %arg1[%c0_5, %c0_6, %c0_7] : memref<2x8x128xf32, #tpu.memory_space<vmem>>, vector<2x8x128xf32>
    %5 = vector.shape_cast %4 : vector<2x8x128xf32> to vector<16x128xf32>
    %c0_8 = arith.constant 0 : index
    %c0_9 = arith.constant 0 : index
    %c0_10 = arith.constant 0 : index
    %6 = vector.load %arg2[%c0_8, %c0_9, %c0_10] : memref<2x8x128xf32, #tpu.memory_space<vmem>>, vector<2x8x128xf32>
    %7 = vector.shape_cast %6 : vector<2x8x128xf32> to vector<16x128xf32>
    %8 = arith.truncf %7 : vector<16x128xf32> to vector<16x128xbf16>
    %9 = vector.extract_strided_slice %0 {offsets = [0, 0], sizes = [128, 128], strides = [1, 1]} : vector<128x768xbf16> to vector<128x128xbf16>
    %cst = arith.constant dense<0.000000e+00> : vector<16x128xf32>
    %10 = tpu.matmul %8, %9, %cst {dimension_numbers = #tpu.dot_dimension_numbers<[1], [0], [0], [1], [0, 0, 1, 1], [], []>} : vector<16x128xbf16>, vector<128x128xbf16>, vector<16x128xf32> -> vector<16x128xf32>
    %11 = vector.broadcast %1 : vector<1x128xf32> to vector<16x128xf32>
    %12 = arith.addf %10, %11 : vector<16x128xf32>
    %cst_11 = arith.constant 0.000000e+00 : f32
    %13 = vector.broadcast %cst_11 : f32 to vector<16x128xf32>
    %14 = arith.maximumf %12, %13 : vector<16x128xf32>
    %15 = vector.shape_cast %14 : vector<16x128xf32> to vector<2x8x128xf32>
    %c0_12 = arith.constant 0 : index
    %c0_13 = arith.constant 0 : index
    %c0_14 = arith.constant 0 : index
    %16 = vector.load %arg7[%c0_12, %c0_13, %c0_14] : memref<2x8x128xf32, #tpu.memory_space<vmem>>, vector<2x8x128xf32>
    tpu.vector_store %arg7[%c0_12, %c0_13, %c0_14], %15 {strides = array<i32>} : memref<2x8x128xf32, #tpu.memory_space<vmem>>, vector<2x8x128xf32>,
    %17 = arith.truncf %5 : vector<16x128xf32> to vector<16x128xbf16>
    %18 = vector.extract_strided_slice %0 {offsets = [0, 128], sizes = [128, 256], strides = [1, 1]} : vector<128x768xbf16> to vector<128x256xbf16>
    %cst_15 = arith.constant dense<0.000000e+00> : vector<16x256xf32>
    %19 = tpu.matmul %17, %18, %cst_15 {dimension_numbers = #tpu.dot_dimension_numbers<[1], [0], [0], [1], [0, 0, 1, 1], [], []>} : vector<16x128xbf16>, vector<128x256xbf16>, vector<16x256xf32> -> vector<16x256xf32>
    %20 = vector.extract_strided_slice %19 {offsets = [0, 0], sizes = [16, 128], strides = [1, 1]} : vector<16x256xf32> to vector<16x128xf32>
    %21 = vector.shape_cast %20 : vector<16x128xf32> to vector<2x8x128xf32>
    %22 = vector.extract_strided_slice %19 {offsets = [0, 128], sizes = [16, 128], strides = [1, 1]} : vector<16x256xf32> to vector<16x128xf32>
    %23 = vector.shape_cast %22 : vector<16x128xf32> to vector<2x8x128xf32>
    %24 = arith.truncf %14 : vector<16x128xf32> to vector<16x128xbf16>
    %25 = vector.extract_strided_slice %0 {offsets = [0, 384], sizes = [128, 256], strides = [1, 1]} : vector<128x768xbf16> to vector<128x256xbf16>
    %cst_16 = arith.constant dense<0.000000e+00> : vector<16x256xf32>
    %26 = tpu.matmul %24, %25, %cst_16 {dimension_numbers = #tpu.dot_dimension_numbers<[1], [0], [0], [1], [0, 0, 1, 1], [], []>} : vector<16x128xbf16>, vector<128x256xbf16>, vector<16x256xf32> -> vector<16x256xf32>
    %27 = vector.extract_strided_slice %26 {offsets = [0, 0], sizes = [16, 128], strides = [1, 1]} : vector<16x256xf32> to vector<16x128xf32>
    %28 = vector.shape_cast %27 : vector<16x128xf32> to vector<2x8x128xf32>
    %29 = vector.extract_strided_slice %26 {offsets = [0, 128], sizes = [16, 128], strides = [1, 1]} : vector<16x256xf32> to vector<16x128xf32>
    %30 = vector.shape_cast %29 : vector<16x128xf32> to vector<2x8x128xf32>
    %31 = arith.truncf %21 : vector<2x8x128xf32> to vector<2x8x128xbf16>
    %32 = arith.truncf %28 : vector<2x8x128xf32> to vector<2x8x128xbf16>
    "tpu.trace_start"() <{level = 10 : i32, message = "bqd,bkd->bqk"}> : () -> ()
    %cst_17 = arith.constant dense<0.000000e+00> : vector<2x8x8xf32>
    %33 = tpu.matmul %31, %32, %cst_17 {dimension_numbers = #tpu.dot_dimension_numbers<[2], [2], [1], [1], [0, 0, 0, 1, 1, 1], [0], [0]>} : vector<2x8x128xbf16>, vector<2x8x128xbf16>, vector<2x8x8xf32> -> vector<2x8x8xf32>
    "tpu.trace_stop"() : () -> ()
    %cst_18 = arith.constant 0.0883883461 : f32
    %34 = vector.broadcast %cst_18 : f32 to vector<2x8x8xf32>
    %35 = arith.mulf %33, %34 : vector<2x8x8xf32>
    %cst_19 = arith.constant dense<0xFF800000> : vector<2x8xf32>
    %36 = vector.multi_reduction <maximumf>, %35, %cst_19 [2] : vector<2x8x8xf32> to vector<2x8xf32>
    %37 = vector.shape_cast %36 : vector<2x8xf32> to vector<2x8x1xf32>
    %38 = vector.broadcast %37 : vector<2x8x1xf32> to vector<2x8x8xf32>
    %39 = arith.subf %35, %38 : vector<2x8x8xf32>
    %40 = math.exp %39 : vector<2x8x8xf32>
    %cst_20 = arith.constant dense<0.000000e+00> : vector<2x8xf32>
    %41 = vector.multi_reduction <add>, %40, %cst_20 [2] : vector<2x8x8xf32> to vector<2x8xf32>
    %42 = vector.shape_cast %41 : vector<2x8xf32> to vector<2x8x1xf32>
    %43 = tpu.reciprocal %42 {approx = true} : vector<2x8x1xf32> -> vector<2x8x1xf32>
    %44 = vector.broadcast %43 : vector<2x8x1xf32> to vector<2x8x8xf32>
    %45 = arith.mulf %40, %44 : vector<2x8x8xf32>
    %46 = arith.truncf %45 : vector<2x8x8xf32> to vector<2x8x8xbf16>
    %47 = arith.truncf %30 : vector<2x8x128xf32> to vector<2x8x128xbf16>
    "tpu.trace_start"() <{level = 10 : i32, message = "bqk,bkd->bqd"}> : () -> ()
    %cst_21 = arith.constant dense<0.000000e+00> : vector<2x8x128xf32>
    %48 = tpu.matmul %46, %47, %cst_21 {dimension_numbers = #tpu.dot_dimension_numbers<[2], [1], [1], [2], [0, 0, 0, 1, 1, 2], [0], [0]>} : vector<2x8x8xbf16>, vector<2x8x128xbf16>, vector<2x8x128xf32> -> vector<2x8x128xf32>
    "tpu.trace_stop"() : () -> ()
    %c0_22 = arith.constant 0 : index
    %c0_23 = arith.constant 0 : index
    %c0_24 = arith.constant 0 : index
    %49 = vector.load %arg3[%c0_22, %c0_23, %c0_24] : memref<2x8x128xf32, #tpu.memory_space<vmem>>, vector<2x8x128xf32>
    %50 = arith.addf %48, %49 : vector<2x8x128xf32>
    %51 = vector.shape_cast %50 : vector<2x8x128xf32> to vector<16x128xf32>
    %52 = arith.truncf %51 : vector<16x128xf32> to vector<16x128xbf16>
    %53 = vector.extract_strided_slice %0 {offsets = [0, 640], sizes = [128, 128], strides = [1, 1]} : vector<128x768xbf16> to vector<128x128xbf16>
    %cst_25 = arith.constant dense<0.000000e+00> : vector<16x128xf32>
    %54 = tpu.matmul %52, %53, %cst_25 {dimension_numbers = #tpu.dot_dimension_numbers<[1], [0], [0], [1], [0, 0, 1, 1], [], []>} : vector<16x128xbf16>, vector<128x128xbf16>, vector<16x128xf32> -> vector<16x128xf32>
    %55 = vector.broadcast %2 : vector<1x128xf32> to vector<16x128xf32>
    %56 = arith.addf %54, %55 : vector<16x128xf32>
    %cst_26 = arith.constant 0.000000e+00 : f32
    %57 = vector.broadcast %cst_26 : f32 to vector<16x128xf32>
    %58 = arith.maximumf %56, %57 : vector<16x128xf32>
    %59 = arith.truncf %58 : vector<16x128xf32> to vector<16x128xbf16>
    %c0_27 = arith.constant 0 : index
    %c0_28 = arith.constant 0 : index
    %60 = vector.load %arg5[%c0_27, %c0_28] : memref<128x3xbf16, #tpu.memory_space<vmem>>, vector<128x3xbf16>
    %cst_29 = arith.constant dense<0.000000e+00> : vector<16x3xf32>
    %61 = tpu.matmul %59, %60, %cst_29 {dimension_numbers = #tpu.dot_dimension_numbers<[1], [0], [0], [1], [0, 0, 1, 1], [], []>} : vector<16x128xbf16>, vector<128x3xbf16>, vector<16x3xf32> -> vector<16x3xf32>
    %62 = vector.shape_cast %61 : vector<16x3xf32> to vector<2x8x3xf32>
    %63 = vector.extract_strided_slice %62 {offsets = [0, 0, 0], sizes = [2, 8, 1], strides = [1, 1, 1]} : vector<2x8x3xf32> to vector<2x8x1xf32>
    %cst_30 = arith.constant dense<0xFF800000> : vector<2x1xf32>
    %64 = vector.multi_reduction <maximumf>, %63, %cst_30 [1] : vector<2x8x1xf32> to vector<2x1xf32>
    %65 = vector.shape_cast %64 : vector<2x1xf32> to vector<2x1x1xf32>
    %66 = vector.broadcast %65 : vector<2x1x1xf32> to vector<2x8x1xf32>
    %67 = arith.subf %63, %66 : vector<2x8x1xf32>
    %68 = math.exp %67 : vector<2x8x1xf32>
    %cst_31 = arith.constant dense<0.000000e+00> : vector<2x1xf32>
    %69 = vector.multi_reduction <add>, %68, %cst_31 [1] : vector<2x8x1xf32> to vector<2x1xf32>
    %70 = vector.shape_cast %69 : vector<2x1xf32> to vector<2x1x1xf32>
    %71 = tpu.reciprocal %70 {approx = true} : vector<2x1x1xf32> -> vector<2x1x1xf32>
    %72 = vector.broadcast %71 : vector<2x1x1xf32> to vector<2x8x1xf32>
    %73 = arith.mulf %68, %72 : vector<2x8x1xf32>
    %74 = vector.extract_strided_slice %62 {offsets = [0, 0, 1], sizes = [2, 8, 1], strides = [1, 1, 1]} : vector<2x8x3xf32> to vector<2x8x1xf32>
    %75 = vector.extract_strided_slice %62 {offsets = [0, 0, 2], sizes = [2, 8, 1], strides = [1, 1, 1]} : vector<2x8x3xf32> to vector<2x8x1xf32>
    %cst_32 = arith.constant dense<0xFF800000> : vector<2x1xf32>
    %76 = vector.multi_reduction <maximumf>, %74, %cst_32 [1] : vector<2x8x1xf32> to vector<2x1xf32>
    %77 = vector.shape_cast %76 : vector<2x1xf32> to vector<2x1x1xf32>
    %78 = vector.broadcast %77 : vector<2x1x1xf32> to vector<2x8x1xf32>
    %79 = arith.subf %74, %78 : vector<2x8x1xf32>
    %80 = math.exp %79 : vector<2x8x1xf32>
    %cst_33 = arith.constant dense<0.000000e+00> : vector<2x1xf32>
    %81 = vector.multi_reduction <add>, %80, %cst_33 [1] : vector<2x8x1xf32> to vector<2x1xf32>
    %82 = vector.shape_cast %81 : vector<2x1xf32> to vector<2x1x1xf32>
    %83 = tpu.reciprocal %82 {approx = true} : vector<2x1x1xf32> -> vector<2x1x1xf32>
    %84 = vector.broadcast %83 : vector<2x1x1xf32> to vector<2x8x1xf32>
    %85 = arith.mulf %80, %84 : vector<2x8x1xf32>
    %cst_34 = arith.constant dense<0xFF800000> : vector<2x1xf32>
    %86 = vector.multi_reduction <maximumf>, %75, %cst_34 [1] : vector<2x8x1xf32> to vector<2x1xf32>
    %87 = vector.shape_cast %86 : vector<2x1xf32> to vector<2x1x1xf32>
    %88 = vector.broadcast %87 : vector<2x1x1xf32> to vector<2x8x1xf32>
    %89 = arith.subf %75, %88 : vector<2x8x1xf32>
    %90 = math.exp %89 : vector<2x8x1xf32>
    %cst_35 = arith.constant dense<0.000000e+00> : vector<2x1xf32>
    %91 = vector.multi_reduction <add>, %90, %cst_35 [1] : vector<2x8x1xf32> to vector<2x1xf32>
    %92 = vector.shape_cast %91 : vector<2x1xf32> to vector<2x1x1xf32>
    %93 = tpu.reciprocal %92 {approx = true} : vector<2x1x1xf32> -> vector<2x1x1xf32>
    %94 = vector.broadcast %93 : vector<2x1x1xf32> to vector<2x8x1xf32>
    %95 = arith.mulf %90, %94 : vector<2x8x1xf32>
    %96 = vector.broadcast %85 : vector<2x8x1xf32> to vector<2x8x128xf32>
    %97 = arith.mulf %96, %23 : vector<2x8x128xf32>
    %cst_36 = arith.constant dense<0.000000e+00> : vector<2x128xf32>
    %98 = vector.multi_reduction <add>, %97, %cst_36 [1] : vector<2x8x128xf32> to vector<2x128xf32>
    %99 = vector.shape_cast %98 : vector<2x128xf32> to vector<2x1x128xf32>
    %100 = vector.broadcast %95 : vector<2x8x1xf32> to vector<2x8x128xf32>
    %101 = vector.broadcast %99 : vector<2x1x128xf32> to vector<2x8x128xf32>
    %102 = arith.mulf %100, %101 : vector<2x8x128xf32>
    %103 = vector.broadcast %73 : vector<2x8x1xf32> to vector<2x8x128xf32>
    %104 = arith.mulf %103, %102 : vector<2x8x128xf32>
    %105 = vector.shape_cast %3 : vector<1x128xf32> to vector<1x1x128xf32>
    %106 = vector.broadcast %105 : vector<1x1x128xf32> to vector<2x8x128xf32>
    %107 = arith.addf %104, %106 : vector<2x8x128xf32>
    %cst_37 = arith.constant 0.000000e+00 : f32
    %108 = vector.broadcast %cst_37 : f32 to vector<2x8x128xf32>
    %109 = arith.maximumf %107, %108 : vector<2x8x128xf32>
    %c0_38 = arith.constant 0 : index
    %c0_39 = arith.constant 0 : index
    %c0_40 = arith.constant 0 : index
    %110 = vector.load %arg8[%c0_38, %c0_39, %c0_40] : memref<2x8x128xf32, #tpu.memory_space<vmem>>, vector<2x8x128xf32>
    tpu.vector_store %arg8[%c0_38, %c0_39, %c0_40], %109 {strides = array<i32>} : memref<2x8x128xf32, #tpu.memory_space<vmem>>, vector<2x8x128xf32>,
    return
  }
  func.func @transform_0(%arg0: i32) -> (i32, i32, i32) {
    %c0_i32 = arith.constant 0 : i32
    %c0_i32_0 = arith.constant 0 : i32
    %c0_i32_1 = arith.constant 0 : i32
    return %arg0, %c0_i32, %c0_i32_0 : i32, i32, i32
  }
  func.func @transform_1(%arg0: i32) -> (i32, i32, i32) {
    %c0_i32 = arith.constant 0 : i32
    %c0_i32_0 = arith.constant 0 : i32
    %c0_i32_1 = arith.constant 0 : i32
    return %arg0, %c0_i32, %c0_i32_0 : i32, i32, i32
  }
  func.func @transform_2(%arg0: i32) -> (i32, i32, i32) {
    %c0_i32 = arith.constant 0 : i32
    %c0_i32_0 = arith.constant 0 : i32
    %c0_i32_1 = arith.constant 0 : i32
    return %arg0, %c0_i32, %c0_i32_0 : i32, i32, i32
  }
  func.func @transform_3(%arg0: i32) -> (i32, i32) {
    %c0_i32 = arith.constant 0 : i32
    %c0_i32_0 = arith.constant 0 : i32
    %c0_i32_1 = arith.constant 0 : i32
    return %c0_i32, %c0_i32_0 : i32, i32
  }
  func.func @transform_4(%arg0: i32) -> (i32, i32) {
    %c0_i32 = arith.constant 0 : i32
    %c0_i32_0 = arith.constant 0 : i32
    %c0_i32_1 = arith.constant 0 : i32
    return %c0_i32, %c0_i32_0 : i32, i32
  }
  func.func @transform_5(%arg0: i32) -> (i32, i32) {
    %c0_i32 = arith.constant 0 : i32
    %c0_i32_0 = arith.constant 0 : i32
    %c0_i32_1 = arith.constant 0 : i32
    return %c0_i32, %c0_i32_0 : i32, i32
  }
  func.func @transform_6(%arg0: i32) -> (i32, i32, i32) {
    %c0_i32 = arith.constant 0 : i32
    %c0_i32_0 = arith.constant 0 : i32
    %c0_i32_1 = arith.constant 0 : i32
    return %arg0, %c0_i32, %c0_i32_0 : i32, i32, i32
  }
  func.func @transform_7(%arg0: i32) -> (i32, i32, i32) {
    %c0_i32 = arith.constant 0 : i32
    %c0_i32_0 = arith.constant 0 : i32
    %c0_i32_1 = arith.constant 0 : i32
    return %arg0, %c0_i32, %c0_i32_0 : i32, i32, i32
  }
}

</mosaic_0001>

<bundles_post_ra>
// kernel: graph_propagate_forward.1
= control target key start
LH: loop header
LB: loop body
LE: loop exit
PB: predicated region body
PF: predicated region fallthrough
CT: control target
= control target key end

     0   :  { %13 = vsyncpa [#allocation3], 0  ;;  %v1386_v1 = vmov 0.0   ;;  %vm1387_vm0 = vmmov 0   ;;  %s1735_s0 = inlined_call_operand.vmem [shape: f32[2,8,128], index: 0, kind: input, shape index: {}]   ;;  %s1736_s1 = inlined_call_operand.vmem [shape: f32[2,8,128], index: 1, kind: input, shape index: {}]   ;;  %s1737_s2 = inlined_call_operand.vmem [shape: f32[2,8,128], index: 2, kind: input, shape index: {}]   ;;  %s1738_s3 = inlined_call_operand.vmem [shape: bf16[128,768], index: 3, kind: input, shape index: {}]   ;;  %s1739_s4 = inlined_call_operand.vmem [shape: bf16[128,3], index: 4, kind: input, shape index: {}]   ;;  %s1740_s5 = inlined_call_operand.vmem [shape: f32[3,128], index: 5, kind: input, shape index: {}]   ;;  %s1741_s6 = inlined_call_operand.hbm [shape: f32[2,8,128], index: 6, kind: output, shape index: {0}]   ;;  %s1742_s7 = inlined_call_operand.hbm [shape: f32[2,8,128], index: 7, kind: output, shape index: {1}]  }
   0x1   :  { %v1226_v0 = vld [vmem:[%s1738_s3] ss:$24 sps:$4 sm:$0xff]   ;;  %1126 = vmatprep.subr.bf16.mxu0 %v1386_v1  ;;  %1142 = vmatprep.mubr.msk.bf16.mxu0 %vm1387_vm0, %v1386_v1  ;;  %v1228_v2 = vld [vmem:[%s1738_s3 + $0x30] ss:$24 sps:$4 sm:$0xff]   ;;  %v1253_v6 = vld [vmem:[%s1738_s3 + $0x4] ss:$24 sps:$4 sm:$0xff]  }
   0x2   :  { %1127 = vmatpush3.bf16.msra.mxu0 %v1226_v0  ;;  %v1230_v3 = vld [vmem:[%s1738_s3 + $0x60] ss:$24 sps:$4 sm:$0xff]   ;;  %v1232_v4 = vld [vmem:[%s1738_s3 + $0x90] ss:$24 sps:$4 sm:$0xff]   ;;  %v1260_v9 = vld [vmem:[%s1738_s3 + $0x34] ss:$24 sps:$4 sm:$0xff]  }
   0x3   :  { %1128 = vmatprep.subr.bf16.mxu0 %v1386_v1  ;;  %v1250_v5 = vld [vmem:[%s1738_s3 + $0x8] ss:$24 sps:$4 sm:$0xff]   ;;  %v1257_v8 = vld [vmem:[%s1738_s3 + $0x38] ss:$24 sps:$4 sm:$0xff]   ;;  %v1267_v12 = vld [vmem:[%s1738_s3 + $0x64] ss:$24 sps:$4 sm:$0xff]  }
   0x4   :  { %v1234_v7 = vld [vmem:[%s1738_s3 + $0xc0] ss:$24 sps:$4 sm:$0xff]   ;;  %262 = vmatprep.subr.bf16.mxu1 %v1250_v5  ;;  %v1236_v10 = vld [vmem:[%s1738_s3 + $0xf0] ss:$24 sps:$4 sm:$0xff]   ;;  %v1274_v15 = vld [vmem:[%s1738_s3 + $0x94] ss:$24 sps:$4 sm:$0xff]  }
   0x5   :  { %263 = vmatpush1.bf16.msra.mxu1 %v1253_v6  ;;  %v1264_v11 = vld [vmem:[%s1738_s3 + $0x68] ss:$24 sps:$4 sm:$0xff]   ;;  %v1271_v13 = vld [vmem:[%s1738_s3 + $0x98] ss:$24 sps:$4 sm:$0xff]   ;;  %v1281_v21 = vld [vmem:[%s1738_s3 + $0xc4] ss:$24 sps:$4 sm:$0xff]  }
   0x6   :  { %1129 = vmatpush3.bf16.msra.mxu0 %v1228_v2  ;;  %264 = vmatprep.subr.bf16.mxu1 %v1257_v8  ;;  %v1238_v14 = vld [vmem:[%s1738_s3 + $0x120] ss:$24 sps:$4 sm:$0xff]   ;;  %v1240_v16 = vld [vmem:[%s1738_s3 + $0x150] ss:$24 sps:$4 sm:$0xff]   ;;  %v1245_v22 = vld [vmem:[%s1738_s3 + $0xc] ss:$24 sps:$4 sm:$0xff]  }
   0x7   :  { %1130 = vmatprep.subr.bf16.mxu0 %v1386_v1  ;;  %v81_v17 = vld [vmem:[%s1736_s1] sm:$0xff]  ;;  %v82_v19 = vld [vmem:[%s1736_s1 + $0x8] sm:$0xff]  ;;  %v1251_v25 = vld [vmem:[%s1738_s3 + $0x3c] ss:$24 sps:$4 sm:$0xff]  }
   0x8   :  { %v1278_v18 = vld [vmem:[%s1738_s3 + $0xc8] ss:$24 sps:$4 sm:$0xff]   ;;  %v83_v23 = vpack.c.bf16 %v82_v19, %v81_v17 }
   0x9   :  { %265 = vmatpush1.bf16.msra.mxu1 %v1260_v9  ;;  %v1242_v20 = vld [vmem:[%s1738_s3 + $0x10] ss:$24 sps:$4 sm:$0xff]   ;;  %v1247_v24 = vld [vmem:[%s1738_s3 + $0x40] ss:$24 sps:$4 sm:$0xff]  }
   0xa   :  { %1131 = vmatpush3.bf16.msra.mxu0 %v1230_v3  ;;  %266 = vmatprep.subr.bf16.mxu1 %v1264_v11 }
   0xb   :  { %1132 = vmatprep.subr.bf16.mxu0 %v1386_v1 }
   0xd   :  { %267 = vmatpush1.bf16.msra.mxu1 %v1267_v12 }
   0xe   :  { %1133 = vmatpush3.bf16.msra.mxu0 %v1232_v4  ;;  %268 = vmatprep.subr.bf16.mxu1 %v1271_v13 }
   0xf   :  { %1134 = vmatprep.subr.bf16.mxu0 %v1386_v1 }
  0x11   :  { %269 = vmatpush1.bf16.msra.mxu1 %v1274_v15 }
  0x12   :  { %1135 = vmatpush3.bf16.msra.mxu0 %v1234_v7  ;;  %270 = vmatprep.subr.bf16.mxu1 %v1278_v18 }
  0x13   :  { %1136 = vmatprep.subr.bf16.mxu0 %v1386_v1 }
  0x15   :  { %271 = vmatpush1.bf16.msra.mxu1 %v1281_v21 }
  0x16   :  { %1137 = vmatpush3.bf16.msra.mxu0 %v1236_v10 }
  0x17   :  { %1138 = vmatprep.subr.bf16.mxu0 %v1386_v1 }
  0x1a   :  { %1139 = vmatpush3.bf16.msra.mxu0 %v1238_v14 }
  0x1b   :  { %1140 = vmatprep.subr.bf16.mxu0 %v1386_v1 }
  0x1e   :  { %1141 = vmatpush3.bf16.msra.mxu0 %v1240_v16 }
  0x1f   :  { %386 = vmatprep.subr.bf16.mxu0 %v1242_v20 }
  0x21   :  { %1143 = vmatmul.mubr.bf16.vlgmr.msra.gmra.mrb[0].mxu0 %v83_v23 }
  0x22   :  { %387 = vmatpush1.bf16.msra.mxu0 %v1245_v22 }
  0x23   :  { %14 = vsyncpa [#allocation5], 0  ;;  %388 = vmatprep.subr.bf16.mxu0 %v1247_v24  ;;  %v1254_v26 = vld [vmem:[%s1738_s3 + $0x70] ss:$24 sps:$4 sm:$0xff]   ;;  %v1258_v27 = vld [vmem:[%s1738_s3 + $0x6c] ss:$24 sps:$4 sm:$0xff]  }
  0x24   :  { %v1261_v28 = vld [vmem:[%s1738_s3 + $0xa0] ss:$24 sps:$4 sm:$0xff]   ;;  %v1265_v29 = vld [vmem:[%s1738_s3 + $0x9c] ss:$24 sps:$4 sm:$0xff]   ;;  %v1268_v30 = vld [vmem:[%s1738_s3 + $0xd0] ss:$24 sps:$4 sm:$0xff]  }
  0x25   :  { %v1272_v31 = vld [vmem:[%s1738_s3 + $0xcc] ss:$24 sps:$4 sm:$0xff]   ;;  %v1275_v32 = vld [vmem:[%s1738_s3 + $0x100] ss:$24 sps:$4 sm:$0xff]   ;;  %v1279_v33 = vld [vmem:[%s1738_s3 + $0xfc] ss:$24 sps:$4 sm:$0xff]  }
  0x26   :  { %389 = vmatpush1.bf16.msra.mxu0 %v1251_v25  ;;  %v1282_v34 = vld [vmem:[%s1738_s3 + $0x130] ss:$24 sps:$4 sm:$0xff]   ;;  %v1286_v36 = vld [vmem:[%s1738_s3 + $0x12c] ss:$24 sps:$4 sm:$0xff]   ;;  %v1289_v38 = vld [vmem:[%s1738_s3 + $0x160] ss:$24 sps:$4 sm:$0xff]  }
  0x27   :  { %390 = vmatprep.subr.bf16.mxu0 %v1254_v26  ;;  %v1285_v35 = vld [vmem:[%s1738_s3 + $0xf8] ss:$24 sps:$4 sm:$0xff]   ;;  %v1288_v37 = vld [vmem:[%s1738_s3 + $0xf4] ss:$24 sps:$4 sm:$0xff]   ;;  %v1292_v39 = vld [vmem:[%s1738_s3 + $0x128] ss:$24 sps:$4 sm:$0xff]  }
  0x28   :  { %272 = vmatprep.subr.bf16.mxu1 %v1285_v35  ;;  %v1293_v40 = vld [vmem:[%s1738_s3 + $0x15c] ss:$24 sps:$4 sm:$0xff]   ;;  %v1296_v42 = vld [vmem:[%s1738_s3 + $0x158] ss:$24 sps:$4 sm:$0xff]   ;;  %v1388_v43 = vmov 0   ;;  %v79_v45 = vld [vmem:[%s1735_s0] sm:$0xff] }
  0x29   :  { %273 = vmatpush1.bf16.msra.mxu1 %v1288_v37  ;;  %v1295_v41 = vld [vmem:[%s1738_s3 + $0x124] ss:$24 sps:$4 sm:$0xff]   ;;  %418 = vmatprep.mubr.bf16.mxu0 %v1388_v43  ;;  %v1297_v44 = vld [vmem:[%s1738_s3 + $0x154] ss:$24 sps:$4 sm:$0xff]   ;;  %v1030_v48 = vld [vmem:[%s1740_s5] ss:$0 sm:$0xff] }
  0x2a   :  { %391 = vmatpush1.bf16.msra.mxu0 %v1258_v27  ;;  %274 = vmatprep.subr.bf16.mxu1 %v1292_v39  ;;  %v80_v46 = vld [vmem:[%s1735_s0 + $0x8] sm:$0xff]  ;;  %v1249_v59 = vld [vmem:[%s1738_s3 + $0x44] ss:$24 sps:$4 sm:$0xff]   ;;  %vm547_vm1 = vcmask 1043456   ;;  %vm515_vm2 = vcmask 64512   ;;  %vm823_vm3 = vcmask 7168  }
  0x2b   :  { %392 = vmatprep.subr.bf16.mxu0 %v1261_v28  ;;  %294 = vmatprep.mubr.bf16.mxu1 %v1388_v43  ;;  %v181_v47 = vpack.c.bf16 %v80_v46, %v79_v45  ;;  %v1244_v57 = vld [vmem:[%s1738_s3 + $0x14] ss:$24 sps:$4 sm:$0xff]   ;;  %v1263_v61 = vld [vmem:[%s1738_s3 + $0xa4] ss:$24 sps:$4 sm:$0xff]   ;;  %vm862_vm4 = vcmask 15368   ;;  %vm901_vm5 = vcmask 23568  }
  0x2c   :  { %v1256_v60 = vld [vmem:[%s1738_s3 + $0x74] ss:$24 sps:$4 sm:$0xff]   ;;  %v1277_v63 = vld [vmem:[%s1738_s3 + $0x104] ss:$24 sps:$4 sm:$0xff]  }
  0x2d   :  { %275 = vmatpush1.bf16.msra.mxu1 %v1295_v41  ;;  %v1270_v62 = vld [vmem:[%s1738_s3 + $0xd4] ss:$24 sps:$4 sm:$0xff]   ;;  %v1291_v2 = vld [vmem:[%s1738_s3 + $0x164] ss:$24 sps:$4 sm:$0xff]  }
  0x2e   :  { %393 = vmatpush1.bf16.msra.mxu0 %v1265_v29  ;;  %276 = vmatprep.subr.bf16.mxu1 %v1296_v42  ;;  %v1284_v0 = vld [vmem:[%s1738_s3 + $0x134] ss:$24 sps:$4 sm:$0xff]  }
  0x2f   :  { %394 = vmatprep.subr.bf16.mxu0 %v1268_v30 }
  0x31   :  { %277 = vmatpush1.bf16.msra.mxu1 %v1297_v44 }
  0x32   :  { %395 = vmatpush1.bf16.msra.mxu0 %v1272_v31  ;;  %1146 = vmatprep.subr.bf16.mxu1 %v1386_v1 }
  0x33   :  { %396 = vmatprep.subr.bf16.mxu0 %v1275_v32 }
  0x34   :  { %295 = vmatmul.mubr.bf16.vlgmr.msra.gmra.mrb[0].mxu1 %v181_v47 }
  0x35   :  { %1148 = vmatprep.mubr.msk.bf16.mxu1 %vm1387_vm0, %v1386_v1 }
  0x36   :  { %397 = vmatpush1.bf16.msra.mxu0 %v1279_v33 }
  0x37   :  { %398 = vmatprep.subr.bf16.mxu0 %v1282_v34 }
  0x3a   :  { %399 = vmatpush1.bf16.msra.mxu0 %v1286_v36 }
  0x3b   :  { %400 = vmatprep.subr.bf16.mxu0 %v1289_v38 }
  0x3e   :  { %401 = vmatpush1.bf16.msra.mxu0 %v1293_v40 }
  0x3f   :  { %1170 = vmatprep.subr.bf16.mxu0 %v1386_v1 }
  0xf4   :  { %v170_v49 = vpop.f32.mrb[0].mxu0 }
  0xf5   :  { %v171_v50 = vadd.f32 %v1030_v48, %v170_v49  ;;  %v1144_v51 = vpop.f32.mrb[1].mxu0 }
  0xf6   :  { %v173_v52 = vpop.f32.mrb[2].mxu0  ;;  %v1299_v51 = vld [vmem:[%s1739_s4 + $0x8] sm:$0xff]  }
  0xf7   :  { %v177_v53 = vmax.f32 %v171_v50, 0.0  ;;  %v174_v54 = vadd.f32 %v1030_v48, %v173_v52  ;;  %v1145_v55 = vpop.f32.mrb[3].mxu0  ;;  %v1298_v50 = vld [vmem:[%s1739_s4] sm:$0xff]   ;;  %v1300_v52 = vld [vmem:[%s1739_s4 + $0x10] sm:$0xff]  }
  0xf8   :  { %v1303_v55 = vld [vmem:[%s1739_s4 + $0x28] sm:$0xff]  }
  0xf9   :  { %179 = vst [vmem:[#allocation2] sm:$0xff] %v177_v53  ;;  %v178_v56 = vmax.f32 %v174_v54, 0.0  ;;  %v1302_v54 = vld [vmem:[%s1739_s4 + $0x20] sm:$0xff]  }
  0xfb   :  { %180 = vst [vmem:[#allocation2 + $0x8] sm:$0xff] %v178_v56  ;;  %v305_v58 = vpack.c.bf16 %v178_v56, %v177_v53  ;;  %v1301_v53 = vld [vmem:[%s1739_s4 + $0x18] sm:$0xff]  }
  0xfd   :  { %419 = vmatmul.mubr.bf16.vlgmr.msra.gmra.mrb[4].mxu0 %v305_v58 }
  0xfe   :  { %1171 = vmatpush3.bf16.msra.mxu0 %v1244_v57  ;;  %1186 = vmatprep.mubr.msk.bf16.mxu0 %vm1387_vm0, %v1386_v1 }
  0xff   :  { %1172 = vmatprep.subr.bf16.mxu0 %v1386_v1 }
 0x102   :  { %1173 = vmatpush3.bf16.msra.mxu0 %v1249_v59 }
 0x103   :  { %1174 = vmatprep.subr.bf16.mxu0 %v1386_v1 }
 0x106   :  { %1175 = vmatpush3.bf16.msra.mxu0 %v1256_v60  ;;  %v542_v60 = vld [vmem:[%s1737_s2] sm:$0xff] }
 0x107   :  { %1176 = vmatprep.subr.bf16.mxu0 %v1386_v1  ;;  %v296_v3 = vpop.f32.mrb[0].mxu1 }
 0x108   :  { %v1619_v4 = vpop.f32.mrb[1].mxu1  ;;  %v429_v14 = vpack.c.bf16 %v296_v3, %v296_v3 }
 0x109   :  { %v300_v5 = vpop.f32.mrb[2].mxu1 }
 0x10a   :  { %1177 = vmatpush3.bf16.msra.mxu0 %v1263_v61  ;;  %v1621_v6 = vpop.f32.mrb[3].mxu1  ;;  %v430_v17 = vpack.c.bf16 %v300_v5, %v300_v5  ;;  %v543_v61 = vld [vmem:[%s1737_s2 + $0x8] sm:$0xff] }
 0x10b   :  { %1178 = vmatprep.subr.bf16.mxu0 %v1386_v1 }
 0x10e   :  { %1179 = vmatpush3.bf16.msra.mxu0 %v1270_v62 }
 0x10f   :  { %1180 = vmatprep.subr.bf16.mxu0 %v1386_v1 }
 0x112   :  { %1181 = vmatpush3.bf16.msra.mxu0 %v1277_v63 }
 0x113   :  { %1182 = vmatprep.subr.bf16.mxu0 %v1386_v1 }
 0x116   :  { %1183 = vmatpush3.bf16.msra.mxu0 %v1284_v0 }
 0x117   :  { %1184 = vmatprep.subr.bf16.mxu0 %v1386_v1 }
 0x11a   :  { %1185 = vmatpush3.bf16.msra.mxu0 %v1291_v2 }
 0x1d0   :  { %v420_v7 = vpop.f32.mrb[4].mxu0 }
 0x1d1   :  { %v431_v8 = vpack.c.bf16 %v420_v7, %v420_v7  ;;  %v422_v9 = vpop.f32.mrb[5].mxu0 }
 0x1d2   :  { %v424_v10 = vpop.f32.mrb[6].mxu0  ;;  %v540_v16 = vpack.c.bf16 %v422_v9, %v422_v9  ;;  %v1305_v9 = vld [vmem:[%s1739_s4 + $0x38] sm:$0xff]  }
 0x1d3   :  { %v426_v11 = vpop.f32.mrb[7].mxu0  ;;  %1147 = vmatpush3.bf16.xpose.msra.mxu1 %v431_v8  ;;  %v432_v15 = vpack.c.bf16 %v424_v10, %v424_v10  ;;  %v1304_v8 = vld [vmem:[%s1739_s4 + $0x30] sm:$0xff]   ;;  %v1073_v10 = vld [vmem:[%s1740_s5 + $0x1] ss:$0 sm:$0xff]  ;;  %s1391_s4 = smov [#allocation2]  }
 0x1d4   :  { %v541_v12 = vpack.c.bf16 %v426_v11, %v426_v11  ;;  %1152 = vmatprep.subr.bf16.mxu1 %v1386_v1  ;;  %v549_v18 = vsel %vm547_vm1, %v540_v16, 0  ;;  %s1003_s29 = sshll.u32 %s1391_s4, 4  ;;  %s1004_s29 = int_to_ptr.vmem [resolvable:$true] %s1003_s29 }
 0x1d5   :  { %s1338_s30 = scalar_lea.vmem %s1004_s29, 256  ;;  %p1343_p1 = scmp.lt.s32.totalorder %s1004_s29, %s1004_s29 }
 0x1d6   :  { %v595_v13 = vsel %vm547_vm1, %v541_v12, 0  ;;  %p1339_p0 = scmp.ne.s32.totalorder %s1004_s29, %s1338_s30  ;;  %p1344_p2 = scmp.lt.s32.totalorder %s1338_s30, %s1338_s30 }
 0x1d8   :  { %p1345_p3 = por %p1344_p2, %p1343_p1 }
 0x1da   :  { %1149 = vmatmul.mubr.bf16.vlgmr.msra.gmra.mrb[4].mxu1 %v429_v14  ;;  %p1346_p4 = pnand %p1345_p3, %p1339_p0 }
 0x1db   :  { %1153 = vmatpush3.bf16.xpose.msra.mxu1 %v432_v15  ;;  %1154 = vmatprep.mubr.msk.bf16.mxu1 %vm1387_vm0, %v1386_v1 }
 0x1dc   :  { %1158 = vmatprep.subr.bf16.mxu1 %v1386_v1 }
 0x1e2   :  { %1155 = vmatmul.mubr.bf16.vlgmr.msra.gmra.mrb[8].mxu1 %v430_v17 }
 0x1e3   :  { %1159 = vmatpush3.bf16.msra.mxu1 %v549_v18  ;;  %1160 = vmatprep.mubr.msk.bf16.mxu1 %vm1387_vm0, %v1386_v1 }
 0x1e4   :  { %1164 = vmatprep.subr.bf16.mxu1 %v1386_v1 }
 0x2ad   :  { %v467_v19 = vpop.f32.mrb[4].mxu1 }
 0x2ae   :  { %v513_v20 = vmul.f32 0.088388346, %v467_v19  ;;  %v1150_v21 = vpop.f32.mrb[5].mxu1 }
 0x2af   :  { %v470_v22 = vpop.f32.mrb[6].mxu1 }
 0x2b0   :  { %v1151_v23 = vpop.f32.mrb[7].mxu1  ;;  %v516_v24 = vsel %vm515_vm2, %v513_v20, -inf }
 0x2b1   :  { %517 = vmax.xlane.f32.xlu0 %v516_v24 }
 0x2b5   :  { %v507_v25 = vpop.f32.mrb[8].mxu1 }
 0x2b6   :  { %v514_v26 = vmul.f32 0.088388346, %v507_v25  ;;  %v1156_v27 = vpop.f32.mrb[9].mxu1 }
 0x2b7   :  { %v510_v28 = vpop.f32.mrb[10].mxu1 }
 0x2b8   :  { %v1157_v29 = vpop.f32.mrb[11].mxu1  ;;  %v519_v30 = vsel %vm515_vm2, %v514_v26, -inf }
 0x2b9   :  { %520 = vmax.xlane.f32.xlu0 %v519_v30 }
 0x33e   :  { %v518_v31 = vpop.xlane.xlu0 %517 }
 0x33f   :  { %v522_v32 = vsub.f32 %v513_v20, %v518_v31 }
 0x341   :  { %v524_v33 = vmul.f32 1.442695, %v522_v32 }
 0x343   :  { %1306 = vpow2.f32 %v524_v33 }
 0x346   :  { %v521_v34 = vpop.xlane.xlu0 %520 }
 0x347   :  { %v523_v35 = vsub.f32 %v514_v26, %v521_v34 }
 0x349   :  { %v526_v36 = vmul.f32 1.442695, %v523_v35 }
 0x34b   :  { %1308 = vpow2.f32 %v526_v36 }
 0x34d   :  { %v1307_v37 = vpop.eup %1306 }
 0x34e   :  { %v528_v38 = vsel %vm515_vm2, %v1307_v37, 0.0 }
 0x34f   :  { %529 = vadd.xlane.f32.xlu1 %v528_v38 }
 0x355   :  { %v1309_v39 = vpop.eup %1308 }
 0x356   :  { %v531_v40 = vsel %vm515_vm2, %v1309_v39, 0.0 }
 0x357   :  { %532 = vadd.xlane.f32.xlu1 %v531_v40 }
 0x3dc   :  { %v530_v41 = vpop.xlane.xlu1 %529 }
 0x3dd   :  { %1310 = vrcp.f32 %v530_v41 }
 0x3e4   :  { %v533_v42 = vpop.xlane.xlu1 %532 }
 0x3e5   :  { %1312 = vrcp.f32 %v533_v42 }
 0x3e7   :  { %v1311_v44 = vpop.eup %1310 }
 0x3e8   :  { %v536_v45 = vmul.f32 %v1311_v44, %v1307_v37 }
 0x3ea   :  { %v538_v46 = vpack.c.bf16 %v536_v45, %v536_v45 }
 0x3ec   :  { %1161 = vmatmul.mubr.msk.bf16.vlgmr.msra.gmra.mrb[12].mxu1 %vm515_vm2, %v538_v46 }
 0x3ed   :  { %1165 = vmatpush3.bf16.msra.mxu1 %v595_v13  ;;  %1166 = vmatprep.mubr.msk.bf16.mxu1 %vm1387_vm0, %v1386_v1 }
 0x3ee   :  { %1190 = vmatprep.subr.bf16.mxu1 %v1386_v1 }
 0x3ef   :  { %v1313_v47 = vpop.eup %1312 }
 0x3f0   :  { %v537_v48 = vmul.f32 %v1313_v47, %v1309_v39 }
 0x3f2   :  { %v539_v49 = vpack.c.bf16 %v537_v48, %v537_v48 }
 0x3f4   :  { %1167 = vmatmul.mubr.msk.bf16.vlgmr.msra.gmra.mrb[16].mxu1 %vm515_vm2, %v539_v49 }
 0x3f5   :  { %1206 = vmatprep.mubr.msk.bf16.mxu1 %vm1387_vm0, %v1386_v1  ;;  %1191 = vmatpush3.bf16.msra.mxu1 %v1298_v50 }
 0x3f6   :  { %1192 = vmatprep.subr.bf16.mxu1 %v1386_v1 }
 0x3f9   :  { %1193 = vmatpush3.bf16.msra.mxu1 %v1299_v51 }
 0x3fa   :  { %1194 = vmatprep.subr.bf16.mxu1 %v1386_v1 }
 0x3fd   :  { %1195 = vmatpush3.bf16.msra.mxu1 %v1300_v52 }
 0x3fe   :  { %1196 = vmatprep.subr.bf16.mxu1 %v1386_v1 }
 0x401   :  { %1197 = vmatpush3.bf16.msra.mxu1 %v1301_v53 }
 0x402   :  { %1198 = vmatprep.subr.bf16.mxu1 %v1386_v1 }
 0x405   :  { %1199 = vmatpush3.bf16.msra.mxu1 %v1302_v54 }
 0x406   :  { %1200 = vmatprep.subr.bf16.mxu1 %v1386_v1 }
 0x409   :  { %1201 = vmatpush3.bf16.msra.mxu1 %v1303_v55 }
 0x40a   :  { %1202 = vmatprep.subr.bf16.mxu1 %v1386_v1 }
 0x40d   :  { %1203 = vmatpush3.bf16.msra.mxu1 %v1304_v8 }
 0x40e   :  { %1204 = vmatprep.subr.bf16.mxu1 %v1386_v1  ;;  %v1389_v1 = vmov 1  }
 0x40f   :  { %1219 = vset.pattern.permute.xlu0 %v1389_v1  ;;  %1220 = vset.pattern.permute.xlu1 %v1389_v1 }
 0x411   :  { %1205 = vmatpush3.bf16.msra.mxu1 %v1305_v9 }
 0x4bf   :  { %v585_v56 = vpop.f32.mrb[12].mxu1 }
 0x4c0   :  { %v1162_v57 = vpop.f32.mrb[13].mxu1  ;;  %v586_v63 = vadd.f32 %v585_v56, %v542_v60 }
 0x4c1   :  { %v588_v58 = vpop.f32.mrb[14].mxu1 }
 0x4c2   :  { %v1163_v59 = vpop.f32.mrb[15].mxu1 }
 0x4c7   :  { %v631_v62 = vpop.f32.mrb[16].mxu1 }
 0x4c8   :  { %v632_v0 = vadd.f32 %v631_v62, %v543_v61  ;;  %v1168_v2 = vpop.f32.mrb[17].mxu1 }
 0x4c9   :  { %v634_v3 = vpop.f32.mrb[18].mxu1 }
 0x4ca   :  { %v637_v5 = vpack.c.bf16 %v632_v0, %v586_v63  ;;  %v1169_v7 = vpop.f32.mrb[19].mxu1 }
 0x4cc   :  { %1187 = vmatmul.mubr.bf16.vlgmr.msra.gmra.mrb[8].mxu0 %v637_v5 }
 0x59f   :  { %v708_v11 = vpop.f32.mrb[8].mxu0 }
 0x5a0   :  { %v709_v12 = vadd.f32 %v1073_v10, %v708_v11  ;;  %v1188_v13 = vpop.f32.mrb[9].mxu0 }
 0x5a1   :  { %v711_v14 = vpop.f32.mrb[10].mxu0 }
 0x5a2   :  { %v712_v15 = vadd.f32 %v1073_v10, %v711_v14  ;;  %v1189_v16 = vpop.f32.mrb[11].mxu0  ;;  %v715_v17 = vmax.f32 %v709_v12, 0.0 }
 0x5a4   :  { %v716_v18 = vmax.f32 %v712_v15, 0.0 }
 0x5a6   :  { %v717_v19 = vpack.c.bf16 %v716_v18, %v715_v17 }
 0x5a8   :  { %1207 = vmatmul.mubr.bf16.vlgmr.msra.gmra.mrb[20].mxu1 %v717_v19 }
 0x67b   :  { %v816_v20 = vpop.f32.mrb[20].mxu1 }
 0x67c   :  { %v824_v21 = vsel %vm823_vm3, %v816_v20, -inf  ;;  %v863_v22 = vsel %vm862_vm4, %v816_v20, -inf  ;;  %v902_v23 = vsel %vm901_vm5, %v816_v20, -inf  ;;  %v1208_v24 = vpop.f32.mrb[21].mxu1 }
 0x67d   :  { %v825_v25 = vrot.slane %v824_v21, 4  ;;  %v864_v26 = vrot.slane %v863_v22, 4  ;;  %v903_v27 = vrot.slane %v902_v23, 4  ;;  %v819_v28 = vpop.f32.mrb[22].mxu1 }
 0x67e   :  { %v831_v29 = vsel %vm823_vm3, %v819_v28, -inf  ;;  %v870_v30 = vsel %vm862_vm4, %v819_v28, -inf  ;;  %v909_v31 = vsel %vm901_vm5, %v819_v28, -inf  ;;  %v1209_v32 = vpop.f32.mrb[23].mxu1 }
 0x67f   :  { %v826_v33 = vmax.f32 %v824_v21, %v825_v25  ;;  %v865_v34 = vmax.f32 %v863_v22, %v864_v26  ;;  %v904_v35 = vmax.f32 %v902_v23, %v903_v27  ;;  %v832_v36 = vrot.slane %v831_v29, 4 }
 0x680   :  { %v871_v37 = vrot.slane %v870_v30, 4  ;;  %v910_v38 = vrot.slane %v909_v31, 4 }
 0x681   :  { %v827_v39 = vrot.slane %v826_v33, 2  ;;  %v866_v40 = vrot.slane %v865_v34, 2  ;;  %v905_v41 = vrot.slane %v904_v35, 2  ;;  %v833_v42 = vmax.f32 %v831_v29, %v832_v36 }
 0x682   :  { %v872_v44 = vmax.f32 %v870_v30, %v871_v37  ;;  %v911_v45 = vmax.f32 %v909_v31, %v910_v38 }
 0x683   :  { %v828_v46 = vmax.f32 %v826_v33, %v827_v39  ;;  %v867_v47 = vmax.f32 %v865_v34, %v866_v40  ;;  %v906_v48 = vmax.f32 %v904_v35, %v905_v41  ;;  %v834_v49 = vrot.slane %v833_v42, 2 }
 0x684   :  { %v873_v50 = vrot.slane %v872_v44, 2  ;;  %v912_v51 = vrot.slane %v911_v45, 2 }
 0x685   :  { %v829_v52 = vrot.slane %v828_v46, 1  ;;  %v868_v53 = vrot.slane %v867_v47, 1  ;;  %v907_v54 = vrot.slane %v906_v48, 1  ;;  %v835_v55 = vmax.f32 %v833_v42, %v834_v49 }
 0x686   :  { %v874_v56 = vmax.f32 %v872_v44, %v873_v50  ;;  %v913_v57 = vmax.f32 %v911_v45, %v912_v51 }
 0x687   :  { %v830_v58 = vmax.f32 %v828_v46, %v829_v52  ;;  %v869_v59 = vmax.f32 %v867_v47, %v868_v53  ;;  %v908_v60 = vmax.f32 %v906_v48, %v907_v54  ;;  %v836_v61 = vrot.slane %v835_v55, 1 }
 0x688   :  { %v875_v62 = vrot.slane %v874_v56, 1  ;;  %v914_v63 = vrot.slane %v913_v57, 1 }
 0x689   :  { %v838_v0 = vsub.f32 %v816_v20, %v830_v58  ;;  %v877_v2 = vsub.f32 %v816_v20, %v869_v59  ;;  %v916_v3 = vsub.f32 %v816_v20, %v908_v60  ;;  %v837_v5 = vmax.f32 %v835_v55, %v836_v61 }
 0x68a   :  { %v876_v7 = vmax.f32 %v874_v56, %v875_v62  ;;  %v915_v8 = vmax.f32 %v913_v57, %v914_v63 }
 0x68b   :  { %v840_v9 = vmul.f32 1.442695, %v838_v0  ;;  %v879_v10 = vmul.f32 1.442695, %v877_v2  ;;  %v918_v11 = vmul.f32 1.442695, %v916_v3  ;;  %v839_v12 = vsub.f32 %v819_v28, %v837_v5 }
 0x68c   :  { %v878_v13 = vsub.f32 %v819_v28, %v876_v7  ;;  %v917_v14 = vsub.f32 %v819_v28, %v915_v8 }
 0x68d   :  { %1314 = vpow2.f32 %v840_v9  ;;  %v842_v17 = vmul.f32 1.442695, %v839_v12 }
 0x68e   :  { %1316 = vpow2.f32 %v879_v10  ;;  %v881_v15 = vmul.f32 1.442695, %v878_v13  ;;  %v920_v16 = vmul.f32 1.442695, %v917_v14 }
 0x68f   :  { %1318 = vpow2.f32 %v918_v11  ;;  %v1390_v11 = vmov 2  }
 0x690   :  { %1320 = vpow2.f32 %v881_v15 }
 0x691   :  { %1322 = vpow2.f32 %v920_v16 }
 0x692   :  { %1324 = vpow2.f32 %v842_v17 }
 0x697   :  { %v1687_v18 = vpop.eup %1314 }
 0x698   :  { %v1317_v19 = vpop.eup %1316  ;;  %v844_v1 = vsel %vm823_vm3, %v1687_v18, 0.0 }
 0x699   :  { %v1319_v20 = vpop.eup %1318  ;;  %v845_v21 = vrot.slane %v844_v1, 4  ;;  %v883_v22 = vsel %vm862_vm4, %v1317_v19, 0.0 }
 0x69a   :  { %v884_v23 = vrot.slane %v883_v22, 4  ;;  %v922_v24 = vsel %vm901_vm5, %v1319_v20, 0.0  ;;  %v1321_v25 = vpop.eup %1320 }
 0x69b   :  { %v923_v26 = vrot.slane %v922_v24, 4  ;;  %v1323_v27 = vpop.eup %1322  ;;  %v890_v29 = vsel %vm862_vm4, %v1321_v25, 0.0  ;;  %v846_v33 = vadd.f32 %v845_v21, %v844_v1 }
 0x69c   :  { %v885_v28 = vadd.f32 %v884_v23, %v883_v22  ;;  %v1325_v30 = vpop.eup %1324  ;;  %v891_v31 = vrot.slane %v890_v29, 4  ;;  %v929_v34 = vsel %vm901_vm5, %v1323_v27, 0.0 }
 0x69d   :  { %v924_v32 = vadd.f32 %v923_v26, %v922_v24  ;;  %v930_v36 = vrot.slane %v929_v34, 4  ;;  %v851_v40 = vsel %vm823_vm3, %v1325_v30, 0.0  ;;  %v847_v44 = vrot.slane %v846_v33, 2 }
 0x69e   :  { %v886_v35 = vrot.slane %v885_v28, 2  ;;  %v892_v37 = vadd.f32 %v891_v31, %v890_v29  ;;  %v852_v48 = vrot.slane %v851_v40, 4 }
 0x69f   :  { %v925_v38 = vrot.slane %v924_v32, 2  ;;  %v931_v46 = vadd.f32 %v930_v36, %v929_v34  ;;  %v848_v52 = vadd.f32 %v847_v44, %v846_v33 }
 0x6a0   :  { %v887_v39 = vadd.f32 %v886_v35, %v885_v28  ;;  %v893_v41 = vrot.slane %v892_v37, 2  ;;  %v853_v55 = vadd.f32 %v852_v48, %v851_v40 }
 0x6a1   :  { %v926_v42 = vadd.f32 %v925_v38, %v924_v32  ;;  %v932_v53 = vrot.slane %v931_v46, 2  ;;  %v849_v57 = vrot.slane %v848_v52, 1 }
 0x6a2   :  { %v888_v45 = vrot.slane %v887_v39, 1  ;;  %v894_v47 = vadd.f32 %v893_v41, %v892_v37  ;;  %v854_v59 = vrot.slane %v853_v55, 2 }
 0x6a3   :  { %v927_v50 = vrot.slane %v926_v42, 1  ;;  %v933_v58 = vadd.f32 %v932_v53, %v931_v46  ;;  %v850_v60 = vadd.f32 %v849_v57, %v848_v52 }
 0x6a4   :  { %v889_v49 = vadd.f32 %v888_v45, %v887_v39  ;;  %v895_v51 = vrot.slane %v894_v47, 1  ;;  %v855_v62 = vadd.f32 %v854_v59, %v853_v55 }
 0x6a5   :  { %v928_v56 = vadd.f32 %v927_v50, %v926_v42  ;;  %v934_v61 = vrot.slane %v933_v58, 1 }
 0x6a6   :  { %1326 = vrcp.f32 %v889_v49  ;;  %v896_v54 = vadd.f32 %v895_v51, %v894_v47  ;;  %v856_v5 = vrot.slane %v855_v62, 1 }
 0x6a7   :  { %v935_v2 = vadd.f32 %v934_v61, %v933_v58 }
 0x6a8   :  { %1328 = vrcp.f32 %v896_v54  ;;  %v857_v9 = vadd.f32 %v856_v5, %v855_v62 }
 0x6a9   :  { %1330 = vrcp.f32 %v928_v56 }
 0x6aa   :  { %1332 = vrcp.f32 %v850_v60 }
 0x6ab   :  { %1334 = vrcp.f32 %v935_v2 }
 0x6ac   :  { %1336 = vrcp.f32 %v857_v9 }
 0x6b0   :  { %v1327_v63 = vpop.eup %1326 }
 0x6b1   :  { %v899_v0 = vmul.f32 %v1327_v63, %v1317_v19 }
 0x6b2   :  { %v1329_v3 = vpop.eup %1328 }
 0x6b3   :  { %942 = vperm.xlu0 %1219, %v899_v0   ;;  %v900_v7 = vmul.f32 %v1329_v3, %v1321_v25  ;;  %v1331_v8 = vpop.eup %1330 }
 0x6b4   :  { %v938_v10 = vmul.f32 %v1331_v8, %v1319_v20  ;;  %v1333_v12 = vpop.eup %1332 }
 0x6b5   :  { %947 = vperm.xlu1 %1220, %v900_v7   ;;  %v860_v13 = vmul.f32 %v1333_v12, %v1687_v18  ;;  %v1335_v14 = vpop.eup %1334 }
 0x6b6   :  { %v939_v15 = vmul.f32 %v1335_v14, %v1323_v27  ;;  %v1337_v16 = vpop.eup %1336 }
 0x6b7   :  { %1225 = vset.pattern.permute.xlu0 %v1388_v43  ;;  %v861_v17 = vmul.f32 %v1337_v16, %v1325_v30 }
 0x6b9   :  { %1221 = vset.pattern.permute.xlu1 %v1390_v11 }
 0x6ba   :  { %966 = vperm.xlu1 %1221, %v938_v10  }
 0x6be   :  { %1222 = vset.pattern.permute.xlu1 %v1388_v43 }
 0x6bf   :  { %978 = vperm.xlu1 %1222, %v860_v13  }
 0x6c3   :  { %1223 = vset.pattern.permute.xlu1 %v1390_v11 }
 0x6c4   :  { %971 = vperm.xlu1 %1223, %v939_v15  }
 0x6c8   :  { %1224 = vset.pattern.permute.xlu1 %v1388_v43 }
 0x6c9   :  { %983 = vperm.xlu1 %1224, %v861_v17  }
 0x6ca   :  { %1349 = shalt.err (!%p1346_p4)
}
 0x6cb   :  { %s1350_s10 = scalar_lea.hbm %s1741_s6, 256 }
 0x6cc   :  { %p1351_p5 = scmp.ne.s32.totalorder %s1741_s6, %s1350_s10  ;;  %p1354_p6 = scmp.lt.u32.totalorder %s1350_s10, %s1741_s6 }
 0x6ce   :  { %p1356_p7 = pnand %p1354_p6, %p1351_p5 }
 0x6d0   :  { %1359 = shalt.err (!%p1356_p7)
}
 0x6d1   :  { %s1392_s14 = smov 128   ;;  %s1393_s15 = smov 8  }
 0x6d2   :  { %1009 = dma.vmem_to_hbm [thread:$0]  %s1004_s29, 256, %s1741_s6, [#allocation3], %s1392_s14, %s1392_s14, %s1393_s15  }
 0x6d3   :  { %s1394_s19 = smov [#allocation4]  }
 0x6d4   :  { %s1015_s0 = sshll.u32 %s1394_s19, 4  ;;  %s1016_s0 = int_to_ptr.vmem [resolvable:$true] %s1015_s0 }
 0x6d5   :  { %s1360_s20 = scalar_lea.vmem %s1016_s0, 256  ;;  %p1365_p9 = scmp.lt.s32.totalorder %s1016_s0, %s1016_s0 }
 0x6d6   :  { %p1361_p8 = scmp.ne.s32.totalorder %s1016_s0, %s1360_s20  ;;  %p1366_p10 = scmp.lt.s32.totalorder %s1360_s20, %s1360_s20 }
 0x6d8   :  { %p1367_p11 = por %p1366_p10, %p1365_p9 }
 0x6da   :  { %p1368_p12 = pnand %p1367_p11, %p1361_p8 }
 0x732   :  { %v943_v43 = vpop.permute.xlu0 %942 }
 0x733   :  { %v950_v18 = vmul.f32 %v943_v43, %v1619_v4  ;;  %v1090_v4 = vld [vmem:[%s1740_s5 + $0x2] ss:$0 sm:$0xff] }
 0x734   :  { %v948_v1 = vpop.permute.xlu1 %947 }
 0x735   :  { %v952_v19 = vrot.slane %v950_v18, 4  ;;  %v951_v20 = vmul.f32 %v948_v1, %v1621_v6 }
 0x737   :  { %v953_v21 = vadd.f32 %v952_v19, %v950_v18  ;;  %v958_v22 = vrot.slane %v951_v20, 4 }
 0x739   :  { %v954_v23 = vrot.slane %v953_v21, 2  ;;  %v959_v24 = vadd.f32 %v958_v22, %v951_v20  ;;  %v967_v25 = vpop.permute.xlu1 %966 }
 0x73b   :  { %v955_v26 = vadd.f32 %v954_v23, %v953_v21  ;;  %v960_v27 = vrot.slane %v959_v24, 2 }
 0x73d   :  { %v956_v28 = vrot.slane %v955_v26, 1  ;;  %v961_v29 = vadd.f32 %v960_v27, %v959_v24 }
 0x73e   :  { %v979_v31 = vpop.permute.xlu1 %978 }
 0x73f   :  { %v957_v30 = vadd.f32 %v956_v28, %v955_v26  ;;  %v962_v32 = vrot.slane %v961_v29, 1 }
 0x741   :  { %v974_v33 = vmul.f32 %v967_v25, %v957_v30  ;;  %v963_v35 = vadd.f32 %v962_v32, %v961_v29 }
 0x743   :  { %v986_v34 = vmul.f32 %v979_v31, %v974_v33  ;;  %v972_v6 = vpop.permute.xlu1 %971 }
 0x744   :  { %v975_v38 = vmul.f32 %v972_v6, %v963_v35 }
 0x745   :  { %v992_v36 = vadd.f32 %v1090_v4, %v986_v34 }
 0x747   :  { %v994_v37 = vmax.f32 %v992_v36, 0.0 }
 0x748   :  { %v984_v39 = vpop.permute.xlu1 %983 }
 0x749   :  { %996 = vst [vmem:[#allocation4] sm:$0xff] %v994_v37  ;;  %v987_v40 = vmul.f32 %v984_v39, %v975_v38 }
 0x74b   :  { %v993_v41 = vadd.f32 %v1090_v4, %v987_v40 }
 0x74d   :  { %v995_v42 = vmax.f32 %v993_v41, 0.0 }
 0x74f   :  { %997 = vst [vmem:[#allocation4 + $0x8] sm:$0xff] %v995_v42 }
 0x750   :  { %1371 = shalt.err (!%p1368_p12)
}
 0x751   :  { %s1372_s22 = scalar_lea.hbm %s1742_s7, 256 }
 0x752   :  { %p1373_p13 = scmp.ne.s32.totalorder %s1742_s7, %s1372_s22  ;;  %p1376_p0 = scmp.lt.u32.totalorder %s1372_s22, %s1742_s7 }
 0x754   :  { %p1378_p1 = pnand %p1376_p0, %p1373_p13 }
 0x756   :  { %1381 = shalt.err (!%p1378_p1)
}
 0x757   :  { %1021 = dma.vmem_to_hbm [thread:$0]  %s1016_s0, 256, %s1742_s7, [#allocation5], %s1392_s14, %s1392_s14, %s1393_s15  }
 0x758   :  { %1382 = dma.done.wait [#allocation3], 256  }
 0x759   :  { %1383 = vsyncadd [#allocation3], 4294967040 }
 0x75a   :  { %1384 = dma.done.wait [#allocation5], 256  }
 0x75b   :  { %1385 = vsyncadd [#allocation5], 4294967040 }
 0x75c   :  { %1028 = vsyncpa [#allocation3], 1 }
 0x75d   :  { %1029 = vsyncpa [#allocation5], 1 }

</bundles_post_ra>
